<compile_context>
chip_gen: v6e
topology: v6e:2x2x1
jax: 0.10.0
libtpu: 0.0.40
codegen_flags: <defaults>
</compile_context>

<pallas_src>
import functools

import jax
import jax.numpy as jnp
from jax.experimental import pallas as pl
from jax.experimental.pallas import tpu as pltpu

BN_EPS = 1e-5
LEAKY_SLOPE = 0.01
LANE = 128


def _round_up(x, m):
    return (x + m - 1) // m * m


def _make_fused_head_kernel(n_real, widths_pad, mxu_dtype):
    """Fused kernel body for the whole layer stack.

    Kernel ref layout:
      refs[0]               : x        (N_pad, C0_pad)  f32
      refs[1 + 2*l]         : w_pad    (Cin_pad, Cout_pad)  of layer l
      refs[2 + 2*l]         : bgb_pad  (3, Cout_pad) rows = [bias, gamma, beta]
      refs[-1]              : output   (N_pad, CL_pad)  f32
    """
    num_layers = len(widths_pad)

    def kernel(*refs):
        x_ref = refs[0]
        o_ref = refs[-1]
        p = refs[1:-1]

        h = x_ref[...]
        n_pad = h.shape[0]

        # Row mask excluding padded rows from the batch statistics.
        # Broadcasts hoisted out of the layer loop (no CSE for broadcast).
        row_ids = jax.lax.broadcasted_iota(jnp.int32, (n_pad, 1), 0)
        row_mask_col = (row_ids < n_real).astype(jnp.float32)
        masks = {wd: jnp.broadcast_to(row_mask_col, (n_pad, wd))
                 for wd in sorted(set(widths_pad))}
        inv_n = jnp.float32(1.0 / n_real)

        for l in range(num_layers):
            w = p[2 * l][...]
            bgb = p[2 * l + 1][...]          # (3, cout_pad)
            b = bgb[0:1, :]
            gamma = bgb[1:2, :]
            beta = bgb[2:3, :]
            mask = masks[widths_pad[l]]

            # Linear on the MXU, f32 accumulation.  Weights are pre-cast at
            # pack time when mxu_dtype != f32; only h is cast in-kernel.
            if mxu_dtype == jnp.float32:
                y = jnp.dot(h, w, preferred_element_type=jnp.float32)
            else:
                y = jnp.dot(h.astype(mxu_dtype), w,
                            preferred_element_type=jnp.float32)
            y = y + b

            # BatchNorm1d (training): two-pass mean / centered variance over
            # the real rows (cheap in-VMEM; avoids E[y^2]-E[y]^2 cancellation).
            mean = jnp.sum(y * mask, axis=0, keepdims=True) * inv_n
            centered = y - mean
            var = jnp.sum(centered * centered * mask, axis=0,
                          keepdims=True) * inv_n          # biased variance
            inv_std = jax.lax.rsqrt(var + BN_EPS)

            # Folded affine: z = y*scale + shift.
            scale = gamma * inv_std
            shift = beta - mean * scale
            z = y * scale + shift

            # LeakyReLU(0.01): max(z, slope*z).
            h = jnp.maximum(z, LEAKY_SLOPE * z)

        o_ref[...] = h

    return kernel


def _vmem_limit_bytes(resident_bytes):
    """Generation-aware VMEM request (v7x has 64 MiB/TC, v5e/v6e 128 MiB)."""
    try:
        cap = int(getattr(pltpu.get_tpu_info(), "vmem_capacity_bytes",
                          64 * 1024 * 1024))
    except Exception:
        cap = 64 * 1024 * 1024  # conservative fallback (v7x per-TC capacity)
    headroom = 16 * 1024 * 1024
    want = max(32 * 1024 * 1024, 2 * int(resident_bytes))
    return int(max(8 * 1024 * 1024, min(cap - headroom, want)))


def pack_head_params(params, insize, *, mxu_dtype=jnp.float32):
    """Pad + pack parameters ONCE (hoisted out of the per-call forward path).

    params: list of (w, b, gamma, beta) with w of shape (Cin, Cout)
            (transpose of PyTorch nn.Linear.weight), b/gamma/beta (1, Cout).
    Returns list of (w_pad, bgb_pad) per layer:
      w_pad   : (cin_pad, cout_pad) in mxu_dtype, zero padded
      bgb_pad : (3, cout_pad) f32, rows = [bias, gamma, beta]
    Zero padding keeps the padded feature columns exactly zero through
    BN + LeakyReLU, so lane padding never leaks into real outputs.
    """
    packed = []
    cur, cur_pad = insize, _round_up(insize, LANE)
    for (w, b, gamma, beta) in params:
        cout = w.shape[1]
        cout_pad = _round_up(cout, LANE)
        w_p = (jnp.zeros((cur_pad, cout_pad), jnp.float32)
               .at[:cur, :cout].set(w.astype(jnp.float32))
               .astype(mxu_dtype))
        bgb = jnp.zeros((3, cout_pad), jnp.float32)
        bgb = bgb.at[0, :cout].set(jnp.reshape(b, (-1,)))
        bgb = bgb.at[1, :cout].set(jnp.reshape(gamma, (-1,)))
        bgb = bgb.at[2, :cout].set(jnp.reshape(beta, (-1,)))
        packed.append((w_p, bgb))
        cur, cur_pad = cout, cout_pad
    return packed


def head_forward(x, packed_params, *, insize, out_size,
                 mxu_dtype=jnp.float32):
    """Forward pass of `Head` as a single fused Pallas kernel.

    packed_params: output of pack_head_params (parameter padding is hoisted
    out of this call path — only x is padded here).
    """
    # x.view(-1, insize)
    x2 = jnp.reshape(x, (-1, insize)).astype(jnp.float32)
    n = x2.shape[0]

    # Rows to sublane multiple (8 for f32 activations, 16 if bf16 MXU path),
    # features to lane multiples (128) => lane-dense output, clean MXU tiles.
    row_mult = 8 if mxu_dtype == jnp.float32 else 16
    n_pad = max(row_mult, _round_up(n, row_mult))
    cin_pad = _round_up(insize, LANE)
    x_p = jnp.zeros((n_pad, cin_pad), jnp.float32).at[:n, :insize].set(x2)

    flat_inputs = [x_p]
    widths_pad = []
    flops = 0
    transcendentals = 0
    cur_pad = cin_pad
    for (w_p, bgb) in packed_params:
        flat_inputs += [w_p, bgb]
        cout_pad = w_p.shape[1]
        widths_pad.append(cout_pad)
        flops += 2 * n_pad * cur_pad * cout_pad
        transcendentals += cout_pad  # rsqrt per feature per layer
        cur_pad = cout_pad

    out_pad = widths_pad[-1]
    out_shape = jax.ShapeDtypeStruct((n_pad, out_pad), jnp.float32)

    # Everything fully resident in VMEM for the single grid step.
    vmem_spec = pl.BlockSpec(memory_space=pltpu.MemorySpace.VMEM)
    in_specs = [vmem_spec] * len(flat_inputs)

    resident_bytes = (sum(int(a.size) * a.dtype.itemsize for a in flat_inputs)
                      + n_pad * out_pad * 4)

    kernel = _make_fused_head_kernel(n, tuple(widths_pad), mxu_dtype)

    out = pl.pallas_call(
        kernel,
        out_shape=out_shape,
        in_specs=in_specs,
        out_specs=vmem_spec,
        compiler_params=pltpu.CompilerParams(
            vmem_limit_bytes=_vmem_limit_bytes(resident_bytes)),
        cost_estimate=pl.CostEstimate(
            flops=int(flops),
            transcendentals=int(transcendentals),
            bytes_accessed=int(resident_bytes)),
    )(*flat_inputs)

    # Slice off the row / lane padding.
    return out[:n, :out_size]


def init_head_params(key, insize, layer_sizes):
    """Deterministic synthetic parameters (shapes match nn.Linear / nn.BatchNorm1d)."""
    params = []
    cur = insize
    for nxt in layer_sizes:
        key, kw, kb = jax.random.split(key, 3)
        bound = 1.0 / jnp.sqrt(jnp.float32(cur))
        w = jax.random.uniform(kw, (cur, nxt), jnp.float32, -bound, bound)
        b = jax.random.uniform(kb, (1, nxt), jnp.float32, -bound, bound)
        gamma = jnp.ones((1, nxt), jnp.float32)   # BatchNorm1d weight init
        beta = jnp.zeros((1, nxt), jnp.float32)   # BatchNorm1d bias init
        params.append((w, b, gamma, beta))
        cur = nxt
    return params


def head_forward_reference(x, params, insize):
    """Pure-JAX reference (Linear -> BN training stats -> LeakyReLU)."""
    h = jnp.reshape(x, (-1, insize)).astype(jnp.float32)
    for (w, b, gamma, beta) in params:
        y = jnp.dot(h, w) + b
        mean = jnp.mean(y, axis=0, keepdims=True)
        var = jnp.mean((y - mean) ** 2, axis=0, keepdims=True)
        z = (y - mean) * jax.lax.rsqrt(var + BN_EPS) * gamma + beta
        h = jnp.where(z > 0, z, LEAKY_SLOPE * z)
    return h


if __name__ == "__main__":
    key = jax.random.PRNGKey(0)
    kx, kp = jax.random.split(key)

    insize = 64
    layer_sizes = [128, 32]

    # Input (4, 4, 16) -> view(-1, 64) -> (4, 64)
    x = jax.random.normal(kx, (4, 4, 16), jnp.float32)
    params = init_head_params(kp, insize, layer_sizes)

    # Parameter padding / packing hoisted out of the per-call forward.
    packed = pack_head_params(params, insize)

    fwd = jax.jit(functools.partial(head_forward, insize=insize,
                                    out_size=layer_sizes[-1]))
    out = jax.block_until_ready(fwd(x, packed))

    assert out.shape == (4, layer_sizes[-1]), out.shape
    assert bool(jnp.all(jnp.isfinite(out)))

    ref = head_forward_reference(x, params, insize)
    max_err = float(jnp.max(jnp.abs(out - ref)))
    assert jnp.allclose(out, ref, rtol=2e-2, atol=2e-2), max_err

    print("KERNEL_OK")
</pallas_src>

<mosaic_0001>
module attributes {stable_mosaic.version = 11 : i64} {
  func.func @kernel(%arg0: memref<8x128xf32, #tpu.memory_space<vmem>>, %arg1: memref<128x128xf32, #tpu.memory_space<vmem>>, %arg2: memref<3x128xf32, #tpu.memory_space<vmem>>, %arg3: memref<128x128xf32, #tpu.memory_space<vmem>>, %arg4: memref<3x128xf32, #tpu.memory_space<vmem>>, %arg5: memref<8x128xf32, #tpu.memory_space<vmem>>) attributes {dimension_semantics = [], scalar_prefetch = 0 : i64, scratch_operands = 0 : i64, tpu.core_type = #tpu.core_type<tc>} {
    %c0 = arith.constant 0 : index
    %c0_0 = arith.constant 0 : index
    %0 = vector.load %arg0[%c0, %c0_0] : memref<8x128xf32, #tpu.memory_space<vmem>>, vector<8x128xf32>
    %1 = tpu.iota {dimensions = array<i32: 0>} : vector<8x1xi32>
    %c4_i32 = arith.constant 4 : i32
    %2 = vector.broadcast %c4_i32 : i32 to vector<8x1xi32>
    %3 = arith.cmpi slt, %1, %2 : vector<8x1xi32>
    %4 = arith.extui %3 : vector<8x1xi1> to vector<8x1xi32>
    %5 = arith.sitofp %4 : vector<8x1xi32> to vector<8x1xf32>
    %6 = vector.shape_cast %5 : vector<8x1xf32> to vector<8x1xf32>
    %7 = vector.broadcast %6 : vector<8x1xf32> to vector<8x128xf32>
    %c0_1 = arith.constant 0 : index
    %c0_2 = arith.constant 0 : index
    %8 = vector.load %arg1[%c0_1, %c0_2] : memref<128x128xf32, #tpu.memory_space<vmem>>, vector<128x128xf32>
    %c0_3 = arith.constant 0 : index
    %c0_4 = arith.constant 0 : index
    %9 = vector.load %arg2[%c0_3, %c0_4] : memref<3x128xf32, #tpu.memory_space<vmem>>, vector<3x128xf32>
    %10 = vector.extract_strided_slice %9 {offsets = [0, 0], sizes = [1, 128], strides = [1, 1]} : vector<3x128xf32> to vector<1x128xf32>
    %11 = vector.extract_strided_slice %9 {offsets = [1, 0], sizes = [1, 128], strides = [1, 1]} : vector<3x128xf32> to vector<1x128xf32>
    %12 = vector.extract_strided_slice %9 {offsets = [2, 0], sizes = [1, 128], strides = [1, 1]} : vector<3x128xf32> to vector<1x128xf32>
    %cst = arith.constant dense<0.000000e+00> : vector<8x128xf32>
    %13 = tpu.matmul %0, %8, %cst {dimension_numbers = #tpu.dot_dimension_numbers<[1], [0], [0], [1], [0, 0, 1, 1], [], []>} : vector<8x128xf32>, vector<128x128xf32>, vector<8x128xf32> -> vector<8x128xf32>
    %14 = vector.broadcast %10 : vector<1x128xf32> to vector<8x128xf32>
    %15 = arith.addf %13, %14 : vector<8x128xf32>
    %16 = arith.mulf %15, %7 : vector<8x128xf32>
    %cst_5 = arith.constant dense<0.000000e+00> : vector<128xf32>
    %17 = vector.multi_reduction <add>, %16, %cst_5 [0] : vector<8x128xf32> to vector<128xf32>
    %18 = vector.shape_cast %17 : vector<128xf32> to vector<1x128xf32>
    %cst_6 = arith.constant 2.500000e-01 : f32
    %19 = vector.broadcast %cst_6 : f32 to vector<1x128xf32>
    %20 = arith.mulf %18, %19 : vector<1x128xf32>
    %21 = vector.broadcast %20 : vector<1x128xf32> to vector<8x128xf32>
    %22 = arith.subf %15, %21 : vector<8x128xf32>
    %23 = arith.mulf %22, %22 : vector<8x128xf32>
    %24 = arith.mulf %23, %7 : vector<8x128xf32>
    %cst_7 = arith.constant dense<0.000000e+00> : vector<128xf32>
    %25 = vector.multi_reduction <add>, %24, %cst_7 [0] : vector<8x128xf32> to vector<128xf32>
    %26 = vector.shape_cast %25 : vector<128xf32> to vector<1x128xf32>
    %cst_8 = arith.constant 2.500000e-01 : f32
    %27 = vector.broadcast %cst_8 : f32 to vector<1x128xf32>
    %28 = arith.mulf %26, %27 : vector<1x128xf32>
    %cst_9 = arith.constant 9.99999974E-6 : f32
    %29 = vector.broadcast %cst_9 : f32 to vector<1x128xf32>
    %30 = arith.addf %28, %29 : vector<1x128xf32>
    %31 = math.rsqrt %30 : vector<1x128xf32>
    %32 = arith.mulf %11, %31 : vector<1x128xf32>
    %33 = arith.mulf %20, %32 : vector<1x128xf32>
    %34 = arith.subf %12, %33 : vector<1x128xf32>
    %35 = vector.broadcast %32 : vector<1x128xf32> to vector<8x128xf32>
    %36 = arith.mulf %15, %35 : vector<8x128xf32>
    %37 = vector.broadcast %34 : vector<1x128xf32> to vector<8x128xf32>
    %38 = arith.addf %36, %37 : vector<8x128xf32>
    %cst_10 = arith.constant 0.00999999977 : f32
    %39 = vector.broadcast %cst_10 : f32 to vector<8x128xf32>
    %40 = arith.mulf %39, %38 : vector<8x128xf32>
    %41 = arith.maximumf %38, %40 : vector<8x128xf32>
    %c0_11 = arith.constant 0 : index
    %c0_12 = arith.constant 0 : index
    %42 = vector.load %arg3[%c0_11, %c0_12] : memref<128x128xf32, #tpu.memory_space<vmem>>, vector<128x128xf32>
    %c0_13 = arith.constant 0 : index
    %c0_14 = arith.constant 0 : index
    %43 = vector.load %arg4[%c0_13, %c0_14] : memref<3x128xf32, #tpu.memory_space<vmem>>, vector<3x128xf32>
    %44 = vector.extract_strided_slice %43 {offsets = [0, 0], sizes = [1, 128], strides = [1, 1]} : vector<3x128xf32> to vector<1x128xf32>
    %45 = vector.extract_strided_slice %43 {offsets = [1, 0], sizes = [1, 128], strides = [1, 1]} : vector<3x128xf32> to vector<1x128xf32>
    %46 = vector.extract_strided_slice %43 {offsets = [2, 0], sizes = [1, 128], strides = [1, 1]} : vector<3x128xf32> to vector<1x128xf32>
    %cst_15 = arith.constant dense<0.000000e+00> : vector<8x128xf32>
    %47 = tpu.matmul %41, %42, %cst_15 {dimension_numbers = #tpu.dot_dimension_numbers<[1], [0], [0], [1], [0, 0, 1, 1], [], []>} : vector<8x128xf32>, vector<128x128xf32>, vector<8x128xf32> -> vector<8x128xf32>
    %48 = vector.broadcast %44 : vector<1x128xf32> to vector<8x128xf32>
    %49 = arith.addf %47, %48 : vector<8x128xf32>
    %50 = arith.mulf %49, %7 : vector<8x128xf32>
    %cst_16 = arith.constant dense<0.000000e+00> : vector<128xf32>
    %51 = vector.multi_reduction <add>, %50, %cst_16 [0] : vector<8x128xf32> to vector<128xf32>
    %52 = vector.shape_cast %51 : vector<128xf32> to vector<1x128xf32>
    %cst_17 = arith.constant 2.500000e-01 : f32
    %53 = vector.broadcast %cst_17 : f32 to vector<1x128xf32>
    %54 = arith.mulf %52, %53 : vector<1x128xf32>
    %55 = vector.broadcast %54 : vector<1x128xf32> to vector<8x128xf32>
    %56 = arith.subf %49, %55 : vector<8x128xf32>
    %57 = arith.mulf %56, %56 : vector<8x128xf32>
    %58 = arith.mulf %57, %7 : vector<8x128xf32>
    %cst_18 = arith.constant dense<0.000000e+00> : vector<128xf32>
    %59 = vector.multi_reduction <add>, %58, %cst_18 [0] : vector<8x128xf32> to vector<128xf32>
    %60 = vector.shape_cast %59 : vector<128xf32> to vector<1x128xf32>
    %cst_19 = arith.constant 2.500000e-01 : f32
    %61 = vector.broadcast %cst_19 : f32 to vector<1x128xf32>
    %62 = arith.mulf %60, %61 : vector<1x128xf32>
    %cst_20 = arith.constant 9.99999974E-6 : f32
    %63 = vector.broadcast %cst_20 : f32 to vector<1x128xf32>
    %64 = arith.addf %62, %63 : vector<1x128xf32>
    %65 = math.rsqrt %64 : vector<1x128xf32>
    %66 = arith.mulf %45, %65 : vector<1x128xf32>
    %67 = arith.mulf %54, %66 : vector<1x128xf32>
    %68 = arith.subf %46, %67 : vector<1x128xf32>
    %69 = vector.broadcast %66 : vector<1x128xf32> to vector<8x128xf32>
    %70 = arith.mulf %49, %69 : vector<8x128xf32>
    %71 = vector.broadcast %68 : vector<1x128xf32> to vector<8x128xf32>
    %72 = arith.addf %70, %71 : vector<8x128xf32>
    %cst_21 = arith.constant 0.00999999977 : f32
    %73 = vector.broadcast %cst_21 : f32 to vector<8x128xf32>
    %74 = arith.mulf %73, %72 : vector<8x128xf32>
    %75 = arith.maximumf %72, %74 : vector<8x128xf32>
    %c0_22 = arith.constant 0 : index
    %c0_23 = arith.constant 0 : index
    %76 = vector.load %arg5[%c0_22, %c0_23] : memref<8x128xf32, #tpu.memory_space<vmem>>, vector<8x128xf32>
    tpu.vector_store %arg5[%c0_22, %c0_23], %75 {strides = array<i32>} : memref<8x128xf32, #tpu.memory_space<vmem>>, vector<8x128xf32>,
    return
  }
}

</mosaic_0001>

<bundles_post_ra>
// kernel: head_forward.1
= control target key start
LH: loop header
LB: loop body
LE: loop exit
PB: predicated region body
PF: predicated region fallthrough
CT: control target
= control target key end

     0   :  { %10 = vsyncpa [#allocation3], 0  ;;  %s573_s0 = inlined_call_operand.vmem [shape: f32[8,128], index: 0, kind: input, shape index: {}]   ;;  %s574_s1 = inlined_call_operand.hbm [shape: f32[128,128], index: 1, kind: input, shape index: {}]   ;;  %s575_s2 = inlined_call_operand.vmem [shape: f32[3,128], index: 2, kind: input, shape index: {}]   ;;  %s576_s3 = inlined_call_operand.hbm [shape: f32[128,128], index: 3, kind: input, shape index: {}]   ;;  %s577_s4 = inlined_call_operand.vmem [shape: f32[3,128], index: 4, kind: input, shape index: {}]   ;;  %s578_s5 = inlined_call_operand.vmem [shape: f32[8,128], index: 5, kind: output, shape index: {}]  }
   0x1   :  { %11 = vsyncpa [#allocation5], 0  ;;  %s478_s18 = smov [#allocation2]  }
   0x2   :  { %s19_s19 = sshll.u32 %s478_s18, 4  ;;  %s20_s19 = int_to_ptr.vmem [resolvable:$true] %s19_s19 }
   0x3   :  { %s442_s20 = scalar_lea.vmem %s20_s19, 2048  ;;  %p447_p1 = scmp.lt.s32.totalorder %s20_s19, %s20_s19 }
   0x4   :  { %p443_p0 = scmp.ne.s32.totalorder %s20_s19, %s442_s20  ;;  %p448_p2 = scmp.lt.s32.totalorder %s442_s20, %s442_s20 }
   0x6   :  { %p449_p3 = por %p448_p2, %p447_p1 }
   0x8   :  { %p450_p4 = pnand %p449_p3, %p443_p0 }
   0xa   :  { %453 = shalt.err (!%p450_p4)
}
   0xb   :  { %s479_s21 = smov 128   ;;  %s480_s22 = smov 8  }
   0xc   :  { %25 = dma.hbm_to_vmem [thread:$0]  %s574_s1, 2048, %s20_s19, [#allocation3], %s479_s21, %s479_s21, %s480_s22  }
   0xd   :  { %s481_s25 = smov [#allocation4]  }
   0xe   :  { %s33_s26 = sshll.u32 %s481_s25, 4  ;;  %s34_s26 = int_to_ptr.vmem [resolvable:$true] %s33_s26 }
   0xf   :  { %s462_s27 = scalar_lea.vmem %s34_s26, 2048  ;;  %p467_p6 = scmp.lt.s32.totalorder %s34_s26, %s34_s26 }
  0x10   :  { %p463_p5 = scmp.ne.s32.totalorder %s34_s26, %s462_s27  ;;  %p468_p7 = scmp.lt.s32.totalorder %s462_s27, %s462_s27 }
  0x12   :  { %p469_p8 = por %p468_p7, %p467_p6 }
  0x14   :  { %p470_p9 = pnand %p469_p8, %p463_p5 }
  0x16   :  { %473 = shalt.err (!%p470_p9)
}
  0x17   :  { %39 = dma.hbm_to_vmem [thread:$0]  %s576_s3, 2048, %s34_s26, [#allocation5], %s479_s21, %s479_s21, %s480_s22  }
  0x18   :  { %474 = dma.done.wait [#allocation3], 2048  }
  0x19   :  { %475 = vsyncadd [#allocation3], 4294965248 }
  0x1a   :  { %476 = dma.done.wait [#allocation5], 2048  }
  0x1b   :  { %477 = vsyncadd [#allocation5], 4294965248  ;;  %v482_v0 = vmov 0.0   ;;  %vm483_vm0 = vmmov 0   ;;  %v69_v1 = vld [vmem:[#allocation2 + $0x78] sm:$0xff]  ;;  %v68_v2 = vld [vmem:[#allocation2 + $0x70] sm:$0xff]  ;;  %v49_v34 = vlaneseq }
  0x1c   :  { %354 = vmatprep.subr.mxu0 %v482_v0  ;;  %386 = vmatprep.mubr.msk.f32.mxu0 %vm483_vm0, %v482_v0  ;;  %v67_v3 = vld [vmem:[#allocation2 + $0x68] sm:$0xff]  ;;  %v66_v4 = vld [vmem:[#allocation2 + $0x60] sm:$0xff]  ;;  %v65_v5 = vld [vmem:[#allocation2 + $0x58] sm:$0xff] }
  0x1d   :  { %389 = vmatprep.subr.mxu1 %v482_v0  ;;  %421 = vmatprep.mubr.msk.f32.mxu1 %vm483_vm0, %v482_v0  ;;  %v64_v6 = vld [vmem:[#allocation2 + $0x50] sm:$0xff]  ;;  %v63_v7 = vld [vmem:[#allocation2 + $0x48] sm:$0xff]  ;;  %v62_v8 = vld [vmem:[#allocation2 + $0x40] sm:$0xff]  ;;  %v557_v35 = vshrl.u32 %v49_v34, 7 }
  0x1e   :  { %355 = vmatpush3.msra.mxu0 %v69_v1  ;;  %v61_v9 = vld [vmem:[#allocation2 + $0x38] sm:$0xff]  ;;  %v60_v10 = vld [vmem:[#allocation2 + $0x30] sm:$0xff]  ;;  %v59_v11 = vld [vmem:[#allocation2 + $0x28] sm:$0xff] }
  0x1f   :  { %356 = vmatprep.subr.mxu0 %v482_v0  ;;  %v58_v12 = vld [vmem:[#allocation2 + $0x20] sm:$0xff]  ;;  %v57_v13 = vld [vmem:[#allocation2 + $0x18] sm:$0xff]  ;;  %v56_v14 = vld [vmem:[#allocation2 + $0x10] sm:$0xff]  ;;  %v73_v36 = vsub.s32 0, %v557_v35  ;;  %vm51_vm1 = vcmp.lt.s32.totalorder %v557_v35, 4 }
  0x20   :  { %357 = vmatpush3.msra.mxu0 %v68_v2  ;;  %v55_v15 = vld [vmem:[#allocation2 + $0x8] sm:$0xff]  ;;  %v54_v16 = vld [vmem:[#allocation2] sm:$0xff]  ;;  %v198_v18 = vld [vmem:[#allocation4 + $0x78] sm:$0xff]  ;;  %v319_v39 = vsel %vm51_vm1, 1.0, %v482_v0 }
  0x21   :  { %358 = vmatprep.subr.mxu0 %v482_v0  ;;  %v48_v17 = vld [vmem:[%s573_s0] sm:$0xff]  ;;  %390 = vmatpush3.msra.mxu1 %v198_v18  ;;  %v197_v19 = vld [vmem:[#allocation4 + $0x70] sm:$0xff]  ;;  %v196_v20 = vld [vmem:[#allocation4 + $0x68] sm:$0xff] }
  0x22   :  { %359 = vmatpush3.msra.mxu0 %v67_v3  ;;  %391 = vmatprep.subr.mxu1 %v482_v0  ;;  %v195_v21 = vld [vmem:[#allocation4 + $0x60] sm:$0xff]  ;;  %v194_v22 = vld [vmem:[#allocation4 + $0x58] sm:$0xff]  ;;  %v193_v23 = vld [vmem:[#allocation4 + $0x50] sm:$0xff] }
  0x23   :  { %360 = vmatprep.subr.mxu0 %v482_v0  ;;  %392 = vmatpush3.msra.mxu1 %v197_v19  ;;  %v192_v24 = vld [vmem:[#allocation4 + $0x48] sm:$0xff]  ;;  %v191_v25 = vld [vmem:[#allocation4 + $0x40] sm:$0xff]  ;;  %v190_v26 = vld [vmem:[#allocation4 + $0x38] sm:$0xff] }
  0x24   :  { %361 = vmatpush3.msra.mxu0 %v66_v4  ;;  %393 = vmatprep.subr.mxu1 %v482_v0  ;;  %v189_v27 = vld [vmem:[#allocation4 + $0x30] sm:$0xff]  ;;  %v188_v28 = vld [vmem:[#allocation4 + $0x28] sm:$0xff]  ;;  %v187_v29 = vld [vmem:[#allocation4 + $0x20] sm:$0xff]  ;;  %v178_v4 = vsub.s32 2, %v557_v35 }
  0x25   :  { %362 = vmatprep.subr.mxu0 %v482_v0  ;;  %394 = vmatpush3.msra.mxu1 %v196_v20  ;;  %v186_v30 = vld [vmem:[#allocation4 + $0x18] sm:$0xff]  ;;  %v185_v31 = vld [vmem:[#allocation4 + $0x10] sm:$0xff]  ;;  %v184_v32 = vld [vmem:[#allocation4 + $0x8] sm:$0xff] }
  0x26   :  { %363 = vmatpush3.msra.mxu0 %v65_v5  ;;  %395 = vmatprep.subr.mxu1 %v482_v0  ;;  %v183_v33 = vld [vmem:[#allocation4] sm:$0xff] }
  0x27   :  { %364 = vmatprep.subr.mxu0 %v482_v0  ;;  %396 = vmatpush3.msra.mxu1 %v195_v21  ;;  %v70_v37 = vld [vmem:[%s575_s2] sm:$0x7] }
  0x28   :  { %365 = vmatpush3.msra.mxu0 %v64_v6  ;;  %397 = vmatprep.subr.mxu1 %v482_v0  ;;  %v74_v38 = vrot.slane %v70_v37, %v73_v36 }
  0x29   :  { %366 = vmatprep.subr.mxu0 %v482_v0  ;;  %398 = vmatpush3.msra.mxu1 %v194_v22 }
  0x2a   :  { %367 = vmatpush3.msra.mxu0 %v63_v7  ;;  %399 = vmatprep.subr.mxu1 %v482_v0 }
  0x2b   :  { %368 = vmatprep.subr.mxu0 %v482_v0  ;;  %400 = vmatpush3.msra.mxu1 %v193_v23 }
  0x2c   :  { %369 = vmatpush3.msra.mxu0 %v62_v8  ;;  %401 = vmatprep.subr.mxu1 %v482_v0 }
  0x2d   :  { %370 = vmatprep.subr.mxu0 %v482_v0  ;;  %402 = vmatpush3.msra.mxu1 %v192_v24 }
  0x2e   :  { %371 = vmatpush3.msra.mxu0 %v61_v9  ;;  %403 = vmatprep.subr.mxu1 %v482_v0 }
  0x2f   :  { %372 = vmatprep.subr.mxu0 %v482_v0  ;;  %404 = vmatpush3.msra.mxu1 %v191_v25 }
  0x30   :  { %373 = vmatpush3.msra.mxu0 %v60_v10  ;;  %405 = vmatprep.subr.mxu1 %v482_v0 }
  0x31   :  { %374 = vmatprep.subr.mxu0 %v482_v0  ;;  %406 = vmatpush3.msra.mxu1 %v190_v26 }
  0x32   :  { %375 = vmatpush3.msra.mxu0 %v59_v11  ;;  %407 = vmatprep.subr.mxu1 %v482_v0  ;;  %v199_v11 = vld [vmem:[%s577_s4] sm:$0x7] }
  0x33   :  { %376 = vmatprep.subr.mxu0 %v482_v0  ;;  %408 = vmatpush3.msra.mxu1 %v189_v27 }
  0x34   :  { %377 = vmatpush3.msra.mxu0 %v58_v12  ;;  %409 = vmatprep.subr.mxu1 %v482_v0  ;;  %v203_v12 = vrot.slane %v199_v11, %v73_v36 }
  0x35   :  { %378 = vmatprep.subr.mxu0 %v482_v0  ;;  %410 = vmatpush3.msra.mxu1 %v188_v28 }
  0x36   :  { %379 = vmatpush3.msra.mxu0 %v57_v13  ;;  %411 = vmatprep.subr.mxu1 %v482_v0 }
  0x37   :  { %380 = vmatprep.subr.mxu0 %v482_v0  ;;  %412 = vmatpush3.msra.mxu1 %v187_v29 }
  0x38   :  { %381 = vmatpush3.msra.mxu0 %v56_v14  ;;  %413 = vmatprep.subr.mxu1 %v482_v0 }
  0x39   :  { %382 = vmatprep.subr.mxu0 %v482_v0  ;;  %414 = vmatpush3.msra.mxu1 %v186_v30 }
  0x3a   :  { %383 = vmatpush3.msra.mxu0 %v55_v15  ;;  %415 = vmatprep.subr.mxu1 %v482_v0 }
  0x3b   :  { %384 = vmatprep.subr.mxu0 %v482_v0  ;;  %416 = vmatpush3.msra.mxu1 %v185_v31 }
  0x3c   :  { %385 = vmatpush3.msra.mxu0 %v54_v16  ;;  %417 = vmatprep.subr.mxu1 %v482_v0 }
  0x3d   :  { %387 = vmatmul.mubr.f32.vlgmr.msra.gmra.mxu0 %v48_v17  ;;  %418 = vmatpush3.msra.mxu1 %v184_v32 }
  0x3e   :  { %419 = vmatprep.subr.mxu1 %v482_v0  ;;  %v173_v0 = vsub.s32 1, %v557_v35 }
  0x3f   :  { %420 = vmatpush3.msra.mxu1 %v183_v33 }
  0xfd   :  { %v141_v40 = vpop.f32.mrf.mxu0 }
  0xfe   :  { %v142_v41 = vadd.f32 %v141_v40, %v74_v38 }
  0xff   :  { %v388_v42 = vpop.f32.mrf.mxu0 }
 0x100   :  { %v145_v43 = vmul.f32 %v319_v39, %v142_v41 }
 0x102   :  { %v146_v44 = vrot.slane %v145_v43, 4 }
 0x104   :  { %v147_v45 = vadd.f32 %v146_v44, %v145_v43 }
 0x106   :  { %v148_v46 = vrot.slane %v147_v45, 2 }
 0x108   :  { %v149_v47 = vadd.f32 %v148_v46, %v147_v45 }
 0x10a   :  { %v150_v48 = vrot.slane %v149_v47, 1 }
 0x10c   :  { %v151_v49 = vadd.f32 %v150_v48, %v149_v47 }
 0x10e   :  { %v152_v50 = vmul.f32 0.25, %v151_v49 }
 0x110   :  { %v153_v51 = vsub.f32 %v142_v41, %v152_v50 }
 0x112   :  { %v154_v52 = vmul.f32 %v153_v51, %v153_v51 }
 0x114   :  { %v155_v53 = vmul.f32 %v319_v39, %v154_v52 }
 0x116   :  { %v156_v54 = vrot.slane %v155_v53, 4 }
 0x118   :  { %v157_v55 = vadd.f32 %v156_v54, %v155_v53 }
 0x11a   :  { %v158_v56 = vrot.slane %v157_v55, 2 }
 0x11c   :  { %v159_v57 = vadd.f32 %v158_v56, %v157_v55 }
 0x11e   :  { %v160_v58 = vrot.slane %v159_v57, 1 }
 0x120   :  { %v161_v59 = vadd.f32 %v160_v58, %v159_v57 }
 0x122   :  { %v162_v60 = vmul.f32 0.25, %v161_v59 }
 0x124   :  { %v163_v61 = vadd.f32 1e-05, %v162_v60 }
 0x126   :  { %430 = vrsqrt.f32 %v163_v61 }
 0x133   :  { %v431_v62 = vpop.eup %430 }
 0x134   :  { %v165_v63 = vmul.f32 %v431_v62, %v70_v37 }
 0x136   :  { %v166_v1 = vmul.f32 %v165_v63, %v152_v50  ;;  %v174_v3 = vrot.slane %v165_v63, %v173_v0 }
 0x138   :  { %v168_v2 = vrot.slane %v166_v1, 7  ;;  %v175_v6 = vmul.f32 %v174_v3, %v142_v41 }
 0x13a   :  { %v170_v5 = vsub.f32 %v70_v37, %v168_v2 }
 0x13c   :  { %v179_v7 = vrot.slane %v170_v5, %v178_v4 }
 0x13e   :  { %v180_v8 = vadd.f32 %v179_v7, %v175_v6 }
 0x140   :  { %v181_v9 = vmul.f32 0.01, %v180_v8 }
 0x142   :  { %v182_v10 = vmax.f32 %v180_v8, %v181_v9 }
 0x144   :  { %422 = vmatmul.mubr.f32.vlgmr.msra.gmra.mxu1 %v182_v10 }
 0x204   :  { %v270_v13 = vpop.f32.mrf.mxu1 }
 0x205   :  { %v271_v14 = vadd.f32 %v270_v13, %v203_v12 }
 0x206   :  { %v423_v15 = vpop.f32.mrf.mxu1 }
 0x207   :  { %v274_v16 = vmul.f32 %v319_v39, %v271_v14 }
 0x209   :  { %v275_v17 = vrot.slane %v274_v16, 4 }
 0x20b   :  { %v276_v18 = vadd.f32 %v275_v17, %v274_v16 }
 0x20d   :  { %v277_v19 = vrot.slane %v276_v18, 2 }
 0x20f   :  { %v278_v20 = vadd.f32 %v277_v19, %v276_v18 }
 0x211   :  { %v279_v21 = vrot.slane %v278_v20, 1 }
 0x213   :  { %v280_v22 = vadd.f32 %v279_v21, %v278_v20 }
 0x215   :  { %v281_v23 = vmul.f32 0.25, %v280_v22 }
 0x217   :  { %v282_v24 = vsub.f32 %v271_v14, %v281_v23 }
 0x219   :  { %v283_v25 = vmul.f32 %v282_v24, %v282_v24 }
 0x21b   :  { %v284_v26 = vmul.f32 %v319_v39, %v283_v25 }
 0x21d   :  { %v285_v27 = vrot.slane %v284_v26, 4 }
 0x21f   :  { %v286_v28 = vadd.f32 %v285_v27, %v284_v26 }
 0x221   :  { %v287_v29 = vrot.slane %v286_v28, 2 }
 0x223   :  { %v288_v30 = vadd.f32 %v287_v29, %v286_v28 }
 0x225   :  { %v289_v31 = vrot.slane %v288_v30, 1 }
 0x227   :  { %v290_v32 = vadd.f32 %v289_v31, %v288_v30 }
 0x229   :  { %v291_v33 = vmul.f32 0.25, %v290_v32 }
 0x22b   :  { %v292_v34 = vadd.f32 1e-05, %v291_v33 }
 0x22d   :  { %432 = vrsqrt.f32 %v292_v34 }
 0x23a   :  { %v433_v35 = vpop.eup %432 }
 0x23b   :  { %v294_v36 = vmul.f32 %v433_v35, %v199_v11 }
 0x23d   :  { %v295_v37 = vmul.f32 %v294_v36, %v281_v23  ;;  %v303_v40 = vrot.slane %v294_v36, %v173_v0 }
 0x23f   :  { %v297_v38 = vrot.slane %v295_v37, 7  ;;  %v304_v42 = vmul.f32 %v303_v40, %v271_v14 }
 0x241   :  { %v299_v41 = vsub.f32 %v199_v11, %v297_v38 }
 0x243   :  { %v308_v43 = vrot.slane %v299_v41, %v178_v4 }
 0x245   :  { %v309_v44 = vadd.f32 %v308_v43, %v304_v42 }
 0x247   :  { %v310_v45 = vmul.f32 0.01, %v309_v44 }
 0x249   :  { %v311_v39 = vmax.f32 %v309_v44, %v310_v45 }
 0x24b   :  { %312 = vst [vmem:[%s578_s5] sm:$0xff] %v311_v39 }
 0x24c   :  { %317 = vsyncpa [#allocation3], 1 }
 0x24d   :  { %318 = vsyncpa [#allocation5], 1 }

</bundles_post_ra>
